<compile_context>
chip_gen: v7x
topology: tpu7x:2x2x1
jax: 0.10.0
libtpu: 0.0.40
codegen_flags: <defaults>
</compile_context>

<pallas_src>
import functools

import jax
import jax.numpy as jnp
from jax import lax
from jax.experimental import pallas as pl
from jax.experimental.pallas import tpu as pltpu


def _diffconv_kernel(x_ref, o_ref, *, sx, sy):
    """x_ref: (TB, TN, SX*SY) input; o_ref: (TB, 5, TN, SX*SY) output groups."""
    L = sx * sy
    x = x_ref[...].astype(jnp.float32)           # (TB, TN, L)

    def shift(v, k):
        # Bring element at flat index i + k to flat index i; wrap-around values
        # land only in positions zeroed by the row/col masks below.
        if L % 128 == 0:
            return pltpu.roll(v, L - k, axis=2)   # XLU lane rotate (free vs VPU)
        # TODO(synk): for non-128-multiple SX*SY, pad the lane axis to the next
        # multiple of 128 (wrapper-side) so pltpu.roll + dense stores are used.
        return jnp.roll(v, -k, axis=2)

    x_dr = shift(x, sy)        # x[r+1, c]
    x_dc = shift(x, 1)         # x[r,   c+1]
    x_drc = shift(x, sy + 1)   # x[r+1, c+1]

    # Boundary masks, computed once on a (1, 1, L) iota (negligible VALU work);
    # jnp.where broadcasts them across the (TB, TN, L) tiles.
    flat = lax.broadcasted_iota(jnp.int32, (1, 1, L), dimension=2)
    mask_r = flat < (sx - 1) * sy            # row < sx - 1
    mask_c = (flat % sy) < (sy - 1)          # col < sy - 1
    mask_rc = jnp.logical_and(mask_r, mask_c)

    # Write each group straight into its slice of the output ref (no concat).
    o_ref[:, 0, :, :] = x                                            # identity
    o_ref[:, 1, :, :] = jnp.where(mask_r, jnp.abs(x - x_dr), 0.0)    # vertical
    o_ref[:, 2, :, :] = jnp.where(mask_c, jnp.abs(x - x_dc), 0.0)    # horizontal
    o_ref[:, 3, :, :] = jnp.where(mask_rc, jnp.abs(x - x_drc), 0.0)  # diagonal
    o_ref[:, 4, :, :] = jnp.where(mask_rc, jnp.abs(x_dr - x_dc), 0.0)  # anti-diag


def _choose_tiles(b, n, l, in_itemsize):
    """Pick (TB, TN): keep the double-buffered (1 in + 5 out f32) footprint
    under ~24 MiB (fits v7x's 64 MiB/TC with headroom, fine on v5e/v6e) while
    maximizing per-step DMA size and keeping the parallel grid >= 2 steps."""
    out_itemsize = 4
    budget = 24 * 1024 * 1024
    per_elem = 2 * (in_itemsize + 5 * out_itemsize)     # double-buffered bytes/elem
    max_elems = max(1, budget // per_elem)

    # Channel tile: must be a multiple of 8 or the full channel dim.
    if n * l <= max_elems:
        tn = n
    else:
        tn = (max_elems // l) // 8 * 8
        if tn == 0:
            # Even an 8-channel tile exceeds the budget (huge SX*SY): take the
            # smallest valid block and widen the VMEM limit in the caller.
            # TODO(synk): add spatial (row) tiling with a 1-row halo for very
            # large SX*SY instead of inflating the VMEM limit.
            tn = min(8, n)
        tn = min(tn, n)

    # Batch tile: grow while the per-step footprint still fits the budget.
    tb = max(1, min(b, max_elems // max(1, tn * l)))

    # Ensure >= 2 parallel grid steps so both v7x TensorCores get work
    # (harmless sequential split on 1-TC v5e/v6e).
    if tb >= b and tn >= n:
        if b > 1:
            tb = (b + 1) // 2
        elif n > 8:
            half = ((n + 1) // 2 + 7) // 8 * 8
            tn = half if half < n else 8
    return tb, tn


def diff_conv(x):
    """x: (B, N, SX, SY) -> (B, 5N, SX, SY) float32 (matches the PyTorch module)."""
    B, N, SX, SY = x.shape
    L = SX * SY
    TB, TN = _choose_tiles(B, N, L, x.dtype.itemsize)
    x_flat = x.reshape(B, N, L)  # free reshape: merges the two minor dims

    # Double-buffered per-step footprint; make the VMEM budget explicit.
    step_bytes = 2 * TB * TN * L * (x.dtype.itemsize + 5 * 4)
    vmem_limit = max(32 * 1024 * 1024, step_bytes + (4 << 20))

    kernel = functools.partial(_diffconv_kernel, sx=SX, sy=SY)
    out = pl.pallas_call(
        kernel,
        out_shape=jax.ShapeDtypeStruct((B, 5, N, L), jnp.float32),
        grid_spec=pl.GridSpec(
            grid=(pl.cdiv(B, TB), pl.cdiv(N, TN)),
            in_specs=[pl.BlockSpec((TB, TN, L), lambda b, c: (b, c, 0))],
            out_specs=pl.BlockSpec((TB, 5, TN, L), lambda b, c: (b, 0, c, 0)),
        ),
        compiler_params=pltpu.CompilerParams(
            dimension_semantics=("parallel", "parallel"),
            vmem_limit_bytes=vmem_limit),
        cost_estimate=pl.CostEstimate(
            flops=10 * B * N * L,
            transcendentals=0,
            bytes_accessed=(x.dtype.itemsize + 5 * 4) * B * N * L),
    )(x_flat)
    # Free reshape: (B, 5, N, L) -> (B, 5N, SX, SY), same memory layout.
    return out.reshape(B, 5 * N, SX, SY)


def _diff_conv_ref(x):
    """Pure-JAX reference mirroring the PyTorch loop semantics."""
    x = x.astype(jnp.float32)
    B, N, SX, SY = x.shape
    out = jnp.zeros((B, 5 * N, SX, SY), jnp.float32)
    out = out.at[:, 0:N].set(x)
    out = out.at[:, N:2 * N, 0:SX - 1, :].set(
        jnp.abs(x[:, :, 0:SX - 1, :] - x[:, :, 1:SX, :]))
    out = out.at[:, 2 * N:3 * N, :, 0:SY - 1].set(
        jnp.abs(x[:, :, :, 0:SY - 1] - x[:, :, :, 1:SY]))
    out = out.at[:, 3 * N:4 * N, 0:SX - 1, 0:SY - 1].set(
        jnp.abs(x[:, :, 0:SX - 1, 0:SY - 1] - x[:, :, 1:SX, 1:SY]))
    out = out.at[:, 4 * N:5 * N, 0:SX - 1, 0:SY - 1].set(
        jnp.abs(x[:, :, 1:SX, 0:SY - 1] - x[:, :, 0:SX - 1, 1:SY]))
    return out


if __name__ == "__main__":
    key = jax.random.PRNGKey(0)
    x = jax.random.normal(key, (2, 4, 16, 16), dtype=jnp.float32)

    out = jax.block_until_ready(diff_conv(x))
    ref = _diff_conv_ref(x)

    assert out.shape == (2, 20, 16, 16)
    assert out.dtype == jnp.float32
    assert jnp.allclose(out, ref, atol=1e-6), "mismatch vs reference"

    print("KERNEL_OK")
</pallas_src>

<mosaic_0001>
module attributes {stable_mosaic.version = 11 : i64} {
  func.func @_diffconv_kernel(%arg0: i32, %arg1: i32, %arg2: memref<1x4x256xf32, #tpu.memory_space<vmem>>, %arg3: memref<1x5x4x256xf32, #tpu.memory_space<vmem>>) attributes {dimension_semantics = [#tpu.dimension_semantics<parallel>, #tpu.dimension_semantics<parallel>], iteration_bounds = array<i64: 2, 1>, scalar_prefetch = 0 : i64, scratch_operands = 0 : i64, tpu.core_type = #tpu.core_type<tc>, window_params = [{transform_indices = @transform_0, window_bounds = array<i64: 1, 4, 256>}, {transform_indices = @transform_1, window_bounds = array<i64: 1, 5, 4, 256>}]} {
    %c0 = arith.constant 0 : index
    %c0_0 = arith.constant 0 : index
    %c0_1 = arith.constant 0 : index
    %0 = vector.load %arg2[%c0, %c0_0, %c0_1] : memref<1x4x256xf32, #tpu.memory_space<vmem>>, vector<1x4x256xf32>
    %c240_i32 = arith.constant 240 : i32
    %1 = tpu.dynamic_rotate %0 by %c240_i32 dim 2 : vector<1x4x256xf32>, i32 -> vector<1x4x256xf32>
    %c255_i32 = arith.constant 255 : i32
    %2 = tpu.dynamic_rotate %0 by %c255_i32 dim 2 : vector<1x4x256xf32>, i32 -> vector<1x4x256xf32>
    %c239_i32 = arith.constant 239 : i32
    %3 = tpu.dynamic_rotate %0 by %c239_i32 dim 2 : vector<1x4x256xf32>, i32 -> vector<1x4x256xf32>
    %4 = tpu.iota {dimensions = array<i32: 2>} : vector<1x1x256xi32>
    %c240_i32_2 = arith.constant 240 : i32
    %5 = vector.broadcast %c240_i32_2 : i32 to vector<1x1x256xi32>
    %6 = arith.cmpi slt, %4, %5 : vector<1x1x256xi32>
    %c16_i32 = arith.constant 16 : i32
    %c0_i32 = arith.constant 0 : i32
    %7 = arith.cmpi eq, %c16_i32, %c0_i32 : i32
    %c1_i32 = arith.constant 1 : i32
    %8 = arith.select %7, %c1_i32, %c16_i32 : i32
    %9 = vector.broadcast %8 : i32 to vector<1x1x256xi32>
    %10 = arith.remsi %4, %9 : vector<1x1x256xi32>
    %c0_i32_3 = arith.constant 0 : i32
    %11 = vector.broadcast %c0_i32_3 : i32 to vector<1x1x256xi32>
    %12 = arith.cmpi ne, %10, %11 : vector<1x1x256xi32>
    %c0_i32_4 = arith.constant 0 : i32
    %13 = vector.broadcast %c0_i32_4 : i32 to vector<1x1x256xi32>
    %14 = arith.cmpi slt, %10, %13 : vector<1x1x256xi32>
    %c0_i32_5 = arith.constant 0 : i32
    %15 = arith.cmpi slt, %8, %c0_i32_5 : i32
    %16 = vector.broadcast %15 : i1 to vector<1x1x256xi1>
    %17 = vector.broadcast %16 : vector<1x1x256xi1> to vector<1x1x256xi1>
    %18 = arith.xori %14, %17 : vector<1x1x256xi1>
    %19 = arith.andi %18, %12 : vector<1x1x256xi1>
    %20 = vector.broadcast %8 : i32 to vector<1x1x256xi32>
    %21 = arith.addi %10, %20 : vector<1x1x256xi32>
    %22 = arith.select %19, %21, %10 : vector<1x1x256xi1>, vector<1x1x256xi32>
    %c15_i32 = arith.constant 15 : i32
    %23 = vector.broadcast %c15_i32 : i32 to vector<1x1x256xi32>
    %24 = arith.cmpi slt, %22, %23 : vector<1x1x256xi32>
    %25 = arith.andi %6, %24 : vector<1x1x256xi1>
    %c0_6 = arith.constant 0 : index
    %c0_7 = arith.constant 0 : index
    %c0_8 = arith.constant 0 : index
    %c0_9 = arith.constant 0 : index
    %26 = vector.load %arg3[%c0_6, %c0_7, %c0_8, %c0_9] : memref<1x5x4x256xf32, #tpu.memory_space<vmem>>, vector<1x1x4x256xf32>
    %27 = vector.shape_cast %26 : vector<1x1x4x256xf32> to vector<1x4x256xf32>
    %28 = vector.shape_cast %0 : vector<1x4x256xf32> to vector<1x1x4x256xf32>
    tpu.vector_store %arg3[%c0_6, %c0_7, %c0_8, %c0_9], %28 {strides = array<i32>} : memref<1x5x4x256xf32, #tpu.memory_space<vmem>>, vector<1x1x4x256xf32>,
    %29 = arith.subf %0, %1 : vector<1x4x256xf32>
    %30 = math.absf %29 : vector<1x4x256xf32>
    %cst = arith.constant 0.000000e+00 : f32
    %31 = vector.shape_cast %6 : vector<1x1x256xi1> to vector<1x1x256xi1>
    %32 = vector.broadcast %31 : vector<1x1x256xi1> to vector<1x4x256xi1>
    %33 = vector.broadcast %cst : f32 to vector<1x4x256xf32>
    %34 = arith.select %32, %30, %33 : vector<1x4x256xi1>, vector<1x4x256xf32>
    %c0_10 = arith.constant 0 : index
    %c1 = arith.constant 1 : index
    %c0_11 = arith.constant 0 : index
    %c0_12 = arith.constant 0 : index
    %35 = vector.load %arg3[%c0_10, %c1, %c0_11, %c0_12] : memref<1x5x4x256xf32, #tpu.memory_space<vmem>>, vector<1x1x4x256xf32>
    %36 = vector.shape_cast %35 : vector<1x1x4x256xf32> to vector<1x4x256xf32>
    %37 = vector.shape_cast %34 : vector<1x4x256xf32> to vector<1x1x4x256xf32>
    tpu.vector_store %arg3[%c0_10, %c1, %c0_11, %c0_12], %37 {strides = array<i32>} : memref<1x5x4x256xf32, #tpu.memory_space<vmem>>, vector<1x1x4x256xf32>,
    %38 = arith.subf %0, %2 : vector<1x4x256xf32>
    %39 = math.absf %38 : vector<1x4x256xf32>
    %cst_13 = arith.constant 0.000000e+00 : f32
    %40 = vector.shape_cast %24 : vector<1x1x256xi1> to vector<1x1x256xi1>
    %41 = vector.broadcast %40 : vector<1x1x256xi1> to vector<1x4x256xi1>
    %42 = vector.broadcast %cst_13 : f32 to vector<1x4x256xf32>
    %43 = arith.select %41, %39, %42 : vector<1x4x256xi1>, vector<1x4x256xf32>
    %c0_14 = arith.constant 0 : index
    %c2 = arith.constant 2 : index
    %c0_15 = arith.constant 0 : index
    %c0_16 = arith.constant 0 : index
    %44 = vector.load %arg3[%c0_14, %c2, %c0_15, %c0_16] : memref<1x5x4x256xf32, #tpu.memory_space<vmem>>, vector<1x1x4x256xf32>
    %45 = vector.shape_cast %44 : vector<1x1x4x256xf32> to vector<1x4x256xf32>
    %46 = vector.shape_cast %43 : vector<1x4x256xf32> to vector<1x1x4x256xf32>
    tpu.vector_store %arg3[%c0_14, %c2, %c0_15, %c0_16], %46 {strides = array<i32>} : memref<1x5x4x256xf32, #tpu.memory_space<vmem>>, vector<1x1x4x256xf32>,
    %47 = arith.subf %0, %3 : vector<1x4x256xf32>
    %48 = math.absf %47 : vector<1x4x256xf32>
    %cst_17 = arith.constant 0.000000e+00 : f32
    %49 = vector.shape_cast %25 : vector<1x1x256xi1> to vector<1x1x256xi1>
    %50 = vector.broadcast %49 : vector<1x1x256xi1> to vector<1x4x256xi1>
    %51 = vector.broadcast %cst_17 : f32 to vector<1x4x256xf32>
    %52 = arith.select %50, %48, %51 : vector<1x4x256xi1>, vector<1x4x256xf32>
    %c0_18 = arith.constant 0 : index
    %c3 = arith.constant 3 : index
    %c0_19 = arith.constant 0 : index
    %c0_20 = arith.constant 0 : index
    %53 = vector.load %arg3[%c0_18, %c3, %c0_19, %c0_20] : memref<1x5x4x256xf32, #tpu.memory_space<vmem>>, vector<1x1x4x256xf32>
    %54 = vector.shape_cast %53 : vector<1x1x4x256xf32> to vector<1x4x256xf32>
    %55 = vector.shape_cast %52 : vector<1x4x256xf32> to vector<1x1x4x256xf32>
    tpu.vector_store %arg3[%c0_18, %c3, %c0_19, %c0_20], %55 {strides = array<i32>} : memref<1x5x4x256xf32, #tpu.memory_space<vmem>>, vector<1x1x4x256xf32>,
    %56 = arith.subf %1, %2 : vector<1x4x256xf32>
    %57 = math.absf %56 : vector<1x4x256xf32>
    %cst_21 = arith.constant 0.000000e+00 : f32
    %58 = vector.shape_cast %25 : vector<1x1x256xi1> to vector<1x1x256xi1>
    %59 = vector.broadcast %58 : vector<1x1x256xi1> to vector<1x4x256xi1>
    %60 = vector.broadcast %cst_21 : f32 to vector<1x4x256xf32>
    %61 = arith.select %59, %57, %60 : vector<1x4x256xi1>, vector<1x4x256xf32>
    %c0_22 = arith.constant 0 : index
    %c4 = arith.constant 4 : index
    %c0_23 = arith.constant 0 : index
    %c0_24 = arith.constant 0 : index
    %62 = vector.load %arg3[%c0_22, %c4, %c0_23, %c0_24] : memref<1x5x4x256xf32, #tpu.memory_space<vmem>>, vector<1x1x4x256xf32>
    %63 = vector.shape_cast %62 : vector<1x1x4x256xf32> to vector<1x4x256xf32>
    %64 = vector.shape_cast %61 : vector<1x4x256xf32> to vector<1x1x4x256xf32>
    tpu.vector_store %arg3[%c0_22, %c4, %c0_23, %c0_24], %64 {strides = array<i32>} : memref<1x5x4x256xf32, #tpu.memory_space<vmem>>, vector<1x1x4x256xf32>,
    return
  }
  func.func @transform_0(%arg0: i32, %arg1: i32) -> (i32, i32, i32) {
    %c0_i32 = arith.constant 0 : i32
    %c0_i32_0 = arith.constant 0 : i32
    return %arg0, %arg1, %c0_i32 : i32, i32, i32
  }
  func.func @transform_1(%arg0: i32, %arg1: i32) -> (i32, i32, i32, i32) {
    %c0_i32 = arith.constant 0 : i32
    %c0_i32_0 = arith.constant 0 : i32
    %c0_i32_1 = arith.constant 0 : i32
    return %arg0, %c0_i32, %arg1, %c0_i32_0 : i32, i32, i32, i32
  }
}

</mosaic_0001>

<bundles_post_ra>
// kernel: tpu_custom_call.1
= control target key start
LH: loop header
LB: loop body
LE: loop exit
PB: predicated region body
PF: predicated region fallthrough
CT: control target
= control target key end

     0   :  { %6 = vsyncpa [#allocation3], 0  ;;  %s819_s0 = inlined_call_operand.hbm [shape: f32[2,4,256], index: 0, kind: input, shape index: {}]   ;;  %s820_s1 = inlined_call_operand.hbm [shape: f32[2,5,4,256], index: 1, kind: output, shape index: {}]  }
   0x1   :  { %8 = vsyncpa [#allocation3 + $0x1], 0 }
   0x2   :  { %9 = vsyncpa [#allocation4], 0 }
   0x3   :  { %11 = vsyncpa [#allocation4 + $0x1], 0  ;;  %s606_s6 = smov 0   ;;  %s608_s7 = smov 0  }
   0x4   :  { %s610_s8 = smov 0   ;;  %s612_s9 = smov 0  }
   0x5   :  { %s614_s10 = smov 0   ;;  %s616_s11 = smov 0  }
   0x6 LB: > { %s388_s12 = sadd.s32 4294967295, %s587_s11   ;;  %s389_s13 = sadd.s32 4294967294, %s587_s11   ;;  %s587_s11 = sphi %s616_s11, %s17_s11   ;;  %s583_s10 = sphi %s614_s10, %s842_s10   ;;  %s579_s9 = sphi %s612_s9, %s841_s9   ;;  %s575_s8 = sphi %s610_s8, %s840_s8   ;;  %s571_s7 = sphi %s608_s7, %s839_s7   ;;  %s567_s6 = sphi %s606_s6, %s838_s6  }
   0x7   : > { %s29_s14 = sadd.s32 1, %s583_s10  ;;  %s38_s15 = sadd.s32 1, %s575_s8 }
   0x8   : > { %p31_p0 = scmp.ge.s32.totalorder %s29_s14, 2  ;;  %p45_p1 = scmp.ne.s32.totalorder %s575_s8, %s571_s7 }
   0x9   : > { %p46_p2 = scmp.eq.s32.totalorder %s587_s11, 0  ;;  %p51_p3 = scmp.ne.s32.totalorder %s571_s7, %s567_s6 }
   0xa   : > { %s844_s14 = smov (%p31_p0, %s29_s14), 0  ;;  %p52_p5 = scmp.eq.s32.totalorder %s388_s12, 0 }
   0xb   : > { %p647_p4 = por %p46_p2, %p45_p1  ;;  %s33_s17 = ssub.s32 %s583_s10, %s844_s14 }
   0xc   : > { %p77_p6 = scmp.eq.s32.totalorder %s388_s12, 1  ;;  %p36_p7 = scmp.eq.s32.totalorder %s33_s17, 0 }
   0xd   : > { %p653_p8 = por %p52_p5, %p51_p3  ;;  %p83_p10 = scmp.eq.s32.totalorder %s389_s13, 1 }
   0xe   : > { %p657_p9 = por %p77_p6, %p45_p1  ;;  %p419_p13 = scmp.lt.s32.totalorder %s587_s11, 2 }
   0xf   : > { %s662_s20 = scalar_select %p36_p7, %s575_s8, %s38_s15  }
  0x10   : > { %s824_s19 = scalar_select %p657_p9, 1, 0 }
  0x11   : > { %p664_p11 = por %p83_p10, %p51_p3  ;;  %s103_s22 = sand.u32 1, %s575_s8  }
  0x12   : > { %s392_s23 = sshll.u32 %s103_s22, 3  ;;  %s404_s24 = sshll.u32 %s583_s10, 7 }
  0x13   : > { %s825_s21 = scalar_select %p664_p11, 1, 0 }
  0x14   : > { %s675_s27 = scalar_lea.hbm %s819_s0, %s404_s24  ;;  %s107_s28 = scalar_lea.vmem [#allocation2], %s392_s23 }
  0x15   : > { %s117_s29 = sshll.u32 %s107_s28, 4  ;;  %p681_p0 = pnand %p419_p13, %p647_p4  ;;  %s677_s29 = int_to_ptr.vmem [resolvable:$true] %s117_s29 }
  0x16   : > { %s104_s2 = scalar_lea.sflag [#allocation3], %s103_s22  ;;  %s475_s3 = scalar_lea.hbm %s675_s27, 128 }
  0x17   : > { %p476_p3 = scmp.ne.s32.totalorder %s675_s27, %s475_s3  ;;  %p477_p5 = pneg %p681_p0 }
  0x18   : > { %s480_s12 = scalar_lea.hbm %s819_s0, 256  ;;  %p481_p4 = scmp.lt.u32.totalorder %s675_s27, %s819_s0 }
  0x19   : > { %p478_p6 = pnand %p477_p5, %p476_p3  ;;  %p482_p10 = scmp.lt.u32.totalorder %s480_s12, %s475_s3 }
  0x1a   : > { %p484_p12 = scmp.lt.u32.totalorder %s475_s3, %s675_s27 }
  0x1b   : > { %p479_p7 = pneg %p478_p6  ;;  %p483_p13 = por %p482_p10, %p481_p4 }
  0x1d   : > { %p485_p1 = por %p484_p12, %p483_p13 }
  0x1f   : > { %p486_p2 = pnand %p485_p1, %p479_p7 }
  0x21   : > { %489 = shalt.err (!%p486_p2)
}
  0x22   : > { %s490_s16 = scalar_lea.vmem %s677_s29, 128  ;;  %s589_s17 = smov [#allocation2]  }
  0x23   : > { %p491_p3 = scmp.ne.s32.totalorder %s677_s29, %s490_s16  ;;  %s495_s22 = sshll.u32 %s589_s17, 4  ;;  %s496_s22 = int_to_ptr.vmem [resolvable:$false] %s495_s22 }
  0x24   : > { %s497_s23 = scalar_lea.vmem %s496_s22, 256  ;;  %p498_p9 = scmp.lt.s32.totalorder %s677_s29, %s496_s22 }
  0x25   : > { %p493_p6 = pnand %p491_p3, %p477_p5  ;;  %p499_p4 = scmp.lt.s32.totalorder %s497_s23, %s490_s16 }
  0x27   : > { %p494_p11 = pneg %p493_p6  ;;  %p500_p10 = por %p499_p4, %p498_p9 }
  0x29   : > { %p501_p12 = pnand %p500_p10, %p494_p11 }
  0x2b   : > { %504 = shalt.err (!%p501_p12)
}
  0x2c   : > { %414 = dma.hbm_to_vmem [thread:$0]  (!%p681_p0), %s675_s27, 128, %s677_s29, %s104_s2  }
  0x2d   : > { %p827_p1 = scmp.lt.s32.totalorder %s587_s11, 3  ;;  %p828_p2 = scmp.ge.s32.totalorder %s587_s11, 1 }
  0x2f   : > { %p123_p5 = pnand %p828_p2, %p827_p1 }
  0x30   : > { %s717_s24 = sand.u32 (!%p123_p5), 1, %s571_s7  }
  0x31   : > { %126 = sbr.rel (%p123_p5) target bundleno = 209 (0xd1), region = 24  ;;  %s396_s25 = sshll.u32 (!%p123_p5), %s717_s24, 3 }
  0x32   : > { %s129_s26 = scalar_lea.sflag (!%p123_p5), [#allocation3], %s717_s24  ;;  %s132_s28 = scalar_lea.vmem (!%p123_p5), [#allocation2], %s396_s25 }
  0x38   : > { %558 = dma.done.wait (%p653_p8), %s129_s26, 128  }
  0x39   : > { %560 = vsyncadd (%p653_p8), %s129_s26, 4294967168  ;;  %s405_s27 = smul.u32 40, %s717_s24  ;;  %v151_v0 = vld [vmem:[%s132_s28] sm:$0xff]  ;;  %s590_s30 = smov 127   ;;  %v159_v2 = vlaneseq }
  0x3a   : > { %164 = vrot.lane.b32.xlu1 %v151_v0, %s590_s30  ;;  %s591_s2 = smov 112   ;;  %v153_v1 = vcombine.high %v151_v0, %v151_v0  ;;  %s592_s3 = smov 111  }
  0x3b   : > { %s726_s29 = scalar_lea.vmem [#allocation5], %s405_s27  ;;  %155 = vrot.lane.b32.xlu0 %v151_v0, %s591_s2  ;;  %v160_v3 = vand.u32 127, %v159_v2  ;;  %s406_s18 = smul.u32 640, %s579_s9 }
  0x3c   : > { %209 = vst [vmem:[%s726_s29] sm:$0xff] %v151_v0  ;;  %s301_s4 = sshll.u32 %s726_s29, 4  ;;  %s286_s9 = scalar_lea.sflag [#allocation4], %s717_s24  ;;  %s769_s4 = int_to_ptr.vmem [resolvable:$true] %s301_s4 }
  0x3d   : > { %v178_v4 = vadd.s32 128, %v160_v3  ;;  %vm168_vm0 = vcmp.lt.s32.totalorder %v160_v3, 127  ;;  %vm161_vm1 = vcmp.lt.s32.totalorder %v160_v3, 112  ;;  %v185_v8 = vand.u32 15, %v160_v3  ;;  %s767_s13 = scalar_lea.hbm %s820_s1, %s406_s18  ;;  %s505_s15 = scalar_lea.vmem %s769_s4, 640 }
  0x3e   : > { %166 = vrot.lane.b32.xlu1 %v153_v1, %s590_s30  ;;  %vm175_vm4 = vcmp.lt.s32.totalorder %v160_v3, 111  ;;  %p506_p8 = scmp.ne.s32.totalorder %s769_s4, %s505_s15  ;;  %p835_p9 = scmp.ne.s32.totalorder %s824_s19, 0 }
  0x3f   : > { %157 = vrot.lane.b32.xlu0 %v153_v1, %s591_s2  ;;  %v192_v7 = vand.u32 15, %v178_v4  ;;  %vm180_vm2 = vcmp.lt.s32.totalorder %v178_v4, 240  ;;  %vm733_vm5 = vcmp.lt.s32.totalorder %v185_v8, 15  ;;  %s593_s16 = smov [#allocation5]  }
  0x40   : > { %p507_p11 = pnand %p506_p8, %p835_p9  ;;  %s509_s17 = sshll.u32 %s593_s16, 4  ;;  %s510_s17 = int_to_ptr.vmem [resolvable:$false] %s509_s17 }
  0x41   : > { %vm729_vm3 = vcmp.lt.s32.totalorder %v192_v7, 15  ;;  %s511_s22 = scalar_lea.vmem %s510_s17, 1280  ;;  %p512_p7 = scmp.lt.s32.totalorder %s769_s4, %s510_s17 }
  0x42   : > { %173 = vrot.lane.b32.xlu1 %v153_v1, %s592_s3  ;;  %vm740_vm6 = vmand %vm180_vm2, %vm729_vm3  ;;  %p508_p0 = pneg %p507_p11  ;;  %p513_p13 = scmp.lt.s32.totalorder %s511_s22, %s505_s15 }
  0x43   : > { %171 = vrot.lane.b32.xlu0 %v151_v0, %s592_s3 }
  0x44   : > { %p514_p3 = por %p513_p13, %p512_p7 }
  0x46   : > { %p515_p6 = pnand %p514_p3, %p508_p0 }
  0xac   : > { %v165_v5 = vpop.permute.xlu1 %164 }
  0xad   : > { %v156_v6 = vpop.permute.xlu0 %155 }
  0xb0   : > { %v167_v9 = vpop.permute.xlu1 %166 }
  0xb1   : > { %v158_v11 = vpop.permute.xlu0 %157  ;;  %v169_v12 = vsel %vm168_vm0, %v165_v5, %v167_v9  ;;  %v170_v13 = vsel %vm168_vm0, %v167_v9, %v165_v5 }
  0xb2   : > { %v162_v14 = vsel %vm161_vm1, %v156_v6, %v158_v11  ;;  %v163_v15 = vsel %vm161_vm1, %v158_v11, %v156_v6  ;;  %v233_v16 = vcombine.low %v169_v12, %v170_v13 }
  0xb3   : > { %v212_v17 = vcombine.low %v162_v14, %v163_v15  ;;  %v273_v18 = vsub.f32 %v162_v14, %v169_v12  ;;  %v274_v19 = vsub.f32 %v163_v15, %v170_v13 }
  0xb4   : > { %v235_v22 = vsub.f32 %v151_v0, %v233_v16  ;;  %v174_v26 = vpop.permute.xlu1 %173 }
  0xb5   : > { %v214_v23 = vsub.f32 %v151_v0, %v212_v17  ;;  %v275_v24 = vand.u32 2147483647, %v273_v18  ;;  %v276_v25 = vand.u32 2147483647, %v274_v19  ;;  %v172_v27 = vpop.permute.xlu0 %171 }
  0xb6   : > { %v176_v28 = vsel %vm175_vm4, %v172_v27, %v174_v26  ;;  %v177_v29 = vsel %vm175_vm4, %v174_v26, %v172_v27  ;;  %v236_v30 = vand.u32 2147483647, %v235_v22 }
  0xb7   : > { %v215_v31 = vand.u32 2147483647, %v214_v23  ;;  %v277_v32 = vsel %vm733_vm5, %v275_v24, 0.0  ;;  %v278_v33 = vsel %vm740_vm6, %v276_v25, 0.0  ;;  %v254_v35 = vcombine.low %v176_v28, %v177_v29 }
  0xb8   : > { %v281_v34 = vcombine.low %v277_v32, %v278_v33  ;;  %v242_v36 = vcombine.high %v236_v30, %v236_v30  ;;  %v244_v39 = vsel %vm733_vm5, %v236_v30, 0.0 }
  0xb9   : > { %v221_v37 = vcombine.high %v215_v31, %v215_v31  ;;  %v256_v38 = vsub.f32 %v151_v0, %v254_v35 }
  0xba   : > { %400 = vst [vmem:[%s726_s29 + $0x20] sm:$0xff] %v281_v34  ;;  %v245_v40 = vsel %vm729_vm3, %v242_v36, 0.0 }
  0xbb   : > { %v224_v41 = vsel %vm180_vm2, %v221_v37, 0.0  ;;  %v248_v42 = vcombine.low %v244_v39, %v245_v40  ;;  %v257_v44 = vand.u32 2147483647, %v256_v38 }
  0xbc   : > { %v227_v43 = vcombine.low %v215_v31, %v224_v41 }
  0xbd   : > { %398 = vst [vmem:[%s726_s29 + $0x10] sm:$0xff] %v248_v42  ;;  %v263_v45 = vcombine.high %v257_v44, %v257_v44  ;;  %v265_v46 = vsel %vm733_vm5, %v257_v44, 0.0 }
  0xbe   : > { %397 = vst [vmem:[%s726_s29 + $0x8] sm:$0xff] %v227_v43 }
  0xbf   : > { %v266_v47 = vsel %vm740_vm6, %v263_v45, 0.0 }
  0xc0   : > { %v269_v48 = vcombine.low %v265_v46, %v266_v47 }
  0xc2   : > { %399 = vst [vmem:[%s726_s29 + $0x18] sm:$0xff] %v269_v48 }
  0xc3   : > { %518 = shalt.err (!%p515_p6)
}
  0xc4   : > { %s519_s23 = scalar_lea.hbm %s767_s13, 640  ;;  %s523_s28 = scalar_lea.hbm %s820_s1, 1280 }
  0xc5   : > { %p520_p4 = scmp.ne.s32.totalorder %s767_s13, %s519_s23  ;;  %p524_p1 = scmp.lt.u32.totalorder %s767_s13, %s820_s1 }
  0xc6   : > { %p525_p2 = scmp.lt.u32.totalorder %s523_s28, %s519_s23  ;;  %p527_p8 = scmp.lt.u32.totalorder %s519_s23, %s767_s13 }
  0xc7   : > { %p521_p10 = pnand %p520_p4, %p835_p9 }
  0xc8   : > { %p526_p5 = por %p525_p2, %p524_p1 }
  0xc9   : > { %p522_p12 = pneg %p521_p10 }
  0xca   : > { %p528_p11 = por %p527_p8, %p526_p5 }
  0xcc   : > { %p529_p0 = pnand %p528_p11, %p522_p12 }
  0xce   : > { %532 = shalt.err (!%p529_p0)
}
  0xcf   : > { %s594_s30 = smov 128   ;;  %s595_s2 = smov 8  }
  0xd0   : > { %409 = dma.vmem_to_hbm [thread:$0]  (%p835_p9), %s769_s4, 640, %s767_s13, %s286_s9, %s594_s30, %s594_s30, %s595_s2  }
  0xd1 PF: > { %s316_s3 = sand.u32 1, %s567_s6   ;;  %p836_p7 = scmp.ne.s32.totalorder %s825_s21, 0 }
  0xd2   : > { %p837_p13 = scmp.ge.s32.totalorder %s587_s11, 2  ;;  %s317_s18 = scalar_lea.sflag [#allocation4], %s316_s3 }
  0xd4   : > { %p416_p3 = pnand %p837_p13, %p836_p7 }
  0xd6   : > { %562 = dma.done.wait (!%p416_p3), %s317_s18, 640  }
  0xd7   : > { %564 = vsyncadd (!%p416_p3), %s317_s18, 4294966656  ;;  %s17_s11 = sadd.s32 1, %s587_s11   ;;  %s838_s6 = smov %s571_s7 }
  0xd8   : > { %p14_p6 = scmp.ge.s32.totalorder %s17_s11, 4   ;;  %s839_s7 = smov %s575_s8 }
  0xd9   : > { %s840_s8 = smov %s662_s20  ;;  %s841_s9 = smov %s583_s10 }
  0xda   : > { %s842_s10 = smov %s844_s14  ;;  %16 = sbr.rel (!%p14_p6) target bundleno = 6 (0x6), region = 73 }
  0xe1   :  { %322 = vsyncpa [#allocation3], 1 }
  0xe2   :  { %324 = vsyncpa [#allocation3 + $0x1], 1 }
  0xe3   :  { %325 = vsyncpa [#allocation4], 1 }
  0xe4   :  { %327 = vsyncpa [#allocation4 + $0x1], 1 }

</bundles_post_ra>
